<compile_context>
chip_gen: v7x
topology: tpu7x:2x2x1
jax: 0.10.0
libtpu: 0.0.40
codegen_flags: <defaults>
</compile_context>

<pallas_src>
import jax
import jax.numpy as jnp
from jax.experimental import pallas as pl
from jax.experimental.pallas import tpu as pltpu


def _tpu_vmem_budget():
    """(per-x-tile byte budget, scoped-VMEM clamp), tuned per TPU generation."""
    try:
        cap = int(pltpu.get_tpu_info().vmem_capacity_bytes)
    except Exception:
        cap = 64 << 20  # be conservative (v7x-sized) if query is unavailable
    if cap <= (64 << 20):          # v7x: 64 MiB physical per TensorCore
        return 6 << 20, 40 << 20
    return 12 << 20, 80 << 20      # v5e / v6e: 128 MiB physical


def _pick_tb(batch, c, itemsize, tile_budget):
    """Largest TB in {8,4,2,1} dividing batch with a >=128-lane tile in budget."""
    for cand in (8, 4, 2):
        if batch % cand == 0 and cand * c * 128 * itemsize <= tile_budget:
            return cand
    return 1


def _make_single_tile_kernel(hw_true):
    inv_hw = 1.0 / float(hw_true)

    def kernel(x_ref, w1_ref, b1_ref, w2_ref, b2_ref, o_ref):
        # x_ref: [TB, C, HW]   w1_ref: [C, Ch]   b1_ref: [1, Ch]
        # w2_ref: [Ch, C]      b2_ref: [1, C]    o_ref:  [TB, 1, C]
        pooled = jnp.sum(x_ref[...].astype(jnp.float32), axis=-1) * inv_hw  # [TB, C]
        h = jnp.dot(pooled, w1_ref[...], preferred_element_type=jnp.float32)
        h = jnp.maximum(h + b1_ref[...].astype(jnp.float32), 0.0)           # [TB, Ch]
        y = jnp.dot(h, w2_ref[...], preferred_element_type=jnp.float32)
        y = y + b2_ref[...].astype(jnp.float32)                             # [TB, C]
        o_ref[...] = jax.nn.sigmoid(y).reshape(o_ref.shape).astype(o_ref.dtype)

    return kernel


def _make_multi_tile_kernel(hw_true, thw, needs_mask):
    inv_hw = 1.0 / float(hw_true)

    def kernel(x_ref, w1_ref, b1_ref, w2_ref, b2_ref, o_ref, acc_ref):
        # x_ref: [TB, C, THW]   acc_ref (scratch): [TB, C, THW] f32
        # o_ref: [TB, 1, C]     weights/biases resident in VMEM
        k = pl.program_id(1)

        @pl.when(k == 0)
        def _init():
            acc_ref[...] = jnp.zeros_like(acc_ref)

        if needs_mask:
            # Only the final tile overlaps the padded region; gate the mask there
            # so full tiles stay a single elementwise VPU add.
            is_tail = (k + 1) * thw > hw_true

            @pl.when(jnp.logical_not(is_tail))
            def _full():
                acc_ref[...] += x_ref[...].astype(jnp.float32)

            @pl.when(is_tail)
            def _tail():
                x = x_ref[...].astype(jnp.float32)
                lane = jax.lax.broadcasted_iota(jnp.int32, x.shape, 2) + k * thw
                acc_ref[...] += jnp.where(lane < hw_true, x, 0.0)
        else:
            acc_ref[...] += x_ref[...].astype(jnp.float32)

        @pl.when(k == pl.num_programs(1) - 1)
        def _finalize():
            pooled = jnp.sum(acc_ref[...], axis=-1) * inv_hw                # [TB, C]
            h = jnp.dot(pooled, w1_ref[...], preferred_element_type=jnp.float32)
            h = jnp.maximum(h + b1_ref[...].astype(jnp.float32), 0.0)       # [TB, Ch]
            y = jnp.dot(h, w2_ref[...], preferred_element_type=jnp.float32)
            y = y + b2_ref[...].astype(jnp.float32)                         # [TB, C]
            o_ref[...] = jax.nn.sigmoid(y).reshape(o_ref.shape).astype(o_ref.dtype)

    return kernel


def squeeze_excitation(x, w1, b1, w2, b2):
    """SE gate weights for x: [B, C, H, W] -> [B, C, 1, 1].

    w1: [C, Ch] (= fc1.weight.T), b1: [Ch], w2: [Ch, C] (= fc2.weight.T), b2: [C].
    """
    B, C, H, W = x.shape
    Ch = w1.shape[1]
    HW = H * W
    itemsize = jnp.dtype(x.dtype).itemsize

    tile_budget, vmem_clamp = _tpu_vmem_budget()
    TB = _pick_tb(B, C, itemsize, tile_budget)

    # Adaptive HW tile: as many lanes as the per-generation tile budget allows,
    # collapsing to a single full-HW tile per batch block when it fits.
    lanes_budget = tile_budget // max(1, TB * C * itemsize)
    if HW <= max(lanes_budget, 128):
        thw, num_hw_tiles = HW, 1
    else:
        thw = min(max(128, (lanes_budget // 128) * 128), (HW // 128) * 128)
        num_hw_tiles = pl.cdiv(HW, thw)
    single_tile = (num_hw_tiles == 1) and (thw == HW)
    needs_mask = (HW % thw) != 0

    x_flat = x.reshape(B, C, HW)
    b1r = b1.reshape(1, Ch)
    b2r = b2.reshape(1, C)

    # VMEM accounting: double-buffered x tile + (multi-tile only) f32 accumulator
    # + resident params + output block + headroom; clamped per generation.
    x_tile_bytes = TB * C * thw * itemsize
    acc_bytes = 0 if single_tile else TB * C * thw * 4
    param_bytes = int(w1.size * w1.dtype.itemsize + b1.size * b1.dtype.itemsize
                      + w2.size * w2.dtype.itemsize + b2.size * b2.dtype.itemsize)
    out_bytes = TB * C * itemsize
    needed = 2 * x_tile_bytes + acc_bytes + 2 * param_bytes + 2 * out_bytes
    vmem_limit = int(min(max(needed + (2 << 20), 8 << 20), vmem_clamp))

    cost = pl.CostEstimate(
        flops=int(B * C * HW + 4 * B * C * Ch),
        transcendentals=int(B * (C + Ch)),
        bytes_accessed=int(B * C * HW * itemsize + param_bytes + B * C * itemsize),
    )

    if single_tile:
        kernel = _make_single_tile_kernel(HW)
        out = pl.pallas_call(
            kernel,
            out_shape=jax.ShapeDtypeStruct((B, 1, C), x.dtype),
            grid=(B // TB,),
            in_specs=[
                pl.BlockSpec((TB, C, HW), lambda b: (b, 0, 0)),   # streamed x block
                pl.BlockSpec((C, Ch), lambda b: (0, 0)),          # resident fc1.W^T
                pl.BlockSpec((1, Ch), lambda b: (0, 0)),          # resident fc1.b
                pl.BlockSpec((Ch, C), lambda b: (0, 0)),          # resident fc2.W^T
                pl.BlockSpec((1, C), lambda b: (0, 0)),           # resident fc2.b
            ],
            out_specs=pl.BlockSpec((TB, 1, C), lambda b: (b, 0, 0)),
            compiler_params=pltpu.CompilerParams(
                dimension_semantics=("parallel",),
                vmem_limit_bytes=vmem_limit,
            ),
            cost_estimate=cost,
        )(x_flat, w1, b1r, w2, b2r)
    else:
        kernel = _make_multi_tile_kernel(HW, thw, needs_mask)
        out = pl.pallas_call(
            kernel,
            out_shape=jax.ShapeDtypeStruct((B, 1, C), x.dtype),
            grid=(B // TB, num_hw_tiles),
            in_specs=[
                pl.BlockSpec((TB, C, thw), lambda b, k: (b, 0, k)),  # streamed x tile
                pl.BlockSpec((C, Ch), lambda b, k: (0, 0)),          # resident fc1.W^T
                pl.BlockSpec((1, Ch), lambda b, k: (0, 0)),          # resident fc1.b
                pl.BlockSpec((Ch, C), lambda b, k: (0, 0)),          # resident fc2.W^T
                pl.BlockSpec((1, C), lambda b, k: (0, 0)),           # resident fc2.b
            ],
            out_specs=pl.BlockSpec((TB, 1, C), lambda b, k: (b, 0, 0)),
            scratch_shapes=[pltpu.VMEM((TB, C, thw), jnp.float32)],
            compiler_params=pltpu.CompilerParams(
                dimension_semantics=("parallel", "arbitrary"),
                vmem_limit_bytes=vmem_limit,
            ),
            cost_estimate=cost,
        )(x_flat, w1, b1r, w2, b2r)

    return out.reshape(B, C, 1, 1)


if __name__ == "__main__":
    # SqueezeExicitationBlock(filter_count=32, r=16) -> hidden = 32 // 16 = 2
    B, C, H, W = 2, 32, 16, 16
    r = 16
    Ch = C // r

    key = jax.random.PRNGKey(0)
    kx, k1, k2, k3, k4 = jax.random.split(key, 5)

    x = jax.random.normal(kx, (B, C, H, W), dtype=jnp.float32)

    # Deterministic synthetic Linear params.
    # PyTorch nn.Linear stores weight as [out, in], y = x @ W.T + b.
    # We pass the already-transposed [in, out] matrices to the kernel.
    bound1 = 1.0 / jnp.sqrt(C)
    bound2 = 1.0 / jnp.sqrt(Ch)
    w1 = jax.random.uniform(k1, (C, Ch), jnp.float32, -bound1, bound1)   # fc1.weight.T
    b1 = jax.random.uniform(k2, (Ch,), jnp.float32, -bound1, bound1)     # fc1.bias
    w2 = jax.random.uniform(k3, (Ch, C), jnp.float32, -bound2, bound2)   # fc2.weight.T
    b2 = jax.random.uniform(k4, (C,), jnp.float32, -bound2, bound2)      # fc2.bias

    out = squeeze_excitation(x, w1, b1, w2, b2)
    out = jax.block_until_ready(out)

    # Reference check in plain JAX.
    pooled = jnp.mean(x, axis=(2, 3))
    ref = jax.nn.sigmoid(jnp.maximum(pooled @ w1 + b1, 0.0) @ w2 + b2)
    ref = ref.reshape(B, C, 1, 1)
    assert out.shape == (B, C, 1, 1)
    assert jnp.allclose(out, ref, atol=1e-5, rtol=1e-5)

    print("KERNEL_OK")
</pallas_src>

<mosaic_0001>
module attributes {stable_mosaic.version = 11 : i64} {
  func.func @kernel(%arg0: i32, %arg1: memref<2x32x256xf32, #tpu.memory_space<vmem>>, %arg2: memref<32x2xf32, #tpu.memory_space<vmem>>, %arg3: memref<1x2xf32, #tpu.memory_space<vmem>>, %arg4: memref<2x32xf32, #tpu.memory_space<vmem>>, %arg5: memref<1x32xf32, #tpu.memory_space<vmem>>, %arg6: memref<2x1x32xf32, #tpu.memory_space<vmem>>) attributes {dimension_semantics = [#tpu.dimension_semantics<parallel>], iteration_bounds = array<i64: 1>, scalar_prefetch = 0 : i64, scratch_operands = 0 : i64, tpu.core_type = #tpu.core_type<tc>, window_params = [{transform_indices = @transform_0, window_bounds = array<i64: 2, 32, 256>}, {pipeline_mode = #tpu.pipeline_mode<synchronous>, transform_indices = @transform_1, window_bounds = array<i64: 32, 2>}, {pipeline_mode = #tpu.pipeline_mode<synchronous>, transform_indices = @transform_2, window_bounds = array<i64: 1, 2>}, {pipeline_mode = #tpu.pipeline_mode<synchronous>, transform_indices = @transform_3, window_bounds = array<i64: 2, 32>}, {pipeline_mode = #tpu.pipeline_mode<synchronous>, transform_indices = @transform_4, window_bounds = array<i64: 1, 32>}, {transform_indices = @transform_5, window_bounds = array<i64: 2, 1, 32>}]} {
    %c0 = arith.constant 0 : index
    %c0_0 = arith.constant 0 : index
    %c0_1 = arith.constant 0 : index
    %0 = vector.load %arg1[%c0, %c0_0, %c0_1] : memref<2x32x256xf32, #tpu.memory_space<vmem>>, vector<2x32x256xf32>
    %cst = arith.constant dense<0.000000e+00> : vector<2x32xf32>
    %1 = vector.multi_reduction <add>, %0, %cst [2] : vector<2x32x256xf32> to vector<2x32xf32>
    %cst_2 = arith.constant 3.906250e-03 : f32
    %2 = vector.broadcast %cst_2 : f32 to vector<2x32xf32>
    %3 = arith.mulf %1, %2 : vector<2x32xf32>
    %c0_3 = arith.constant 0 : index
    %c0_4 = arith.constant 0 : index
    %4 = vector.load %arg2[%c0_3, %c0_4] : memref<32x2xf32, #tpu.memory_space<vmem>>, vector<32x2xf32>
    %cst_5 = arith.constant dense<0.000000e+00> : vector<2x2xf32>
    %5 = tpu.matmul %3, %4, %cst_5 {dimension_numbers = #tpu.dot_dimension_numbers<[1], [0], [0], [1], [0, 0, 1, 1], [], []>} : vector<2x32xf32>, vector<32x2xf32>, vector<2x2xf32> -> vector<2x2xf32>
    %c0_6 = arith.constant 0 : index
    %c0_7 = arith.constant 0 : index
    %6 = vector.load %arg3[%c0_6, %c0_7] : memref<1x2xf32, #tpu.memory_space<vmem>>, vector<1x2xf32>
    %7 = vector.broadcast %6 : vector<1x2xf32> to vector<2x2xf32>
    %8 = arith.addf %5, %7 : vector<2x2xf32>
    %cst_8 = arith.constant 0.000000e+00 : f32
    %9 = vector.broadcast %cst_8 : f32 to vector<2x2xf32>
    %10 = arith.maximumf %8, %9 : vector<2x2xf32>
    %c0_9 = arith.constant 0 : index
    %c0_10 = arith.constant 0 : index
    %11 = vector.load %arg4[%c0_9, %c0_10] : memref<2x32xf32, #tpu.memory_space<vmem>>, vector<2x32xf32>
    %cst_11 = arith.constant dense<0.000000e+00> : vector<2x32xf32>
    %12 = tpu.matmul %10, %11, %cst_11 {dimension_numbers = #tpu.dot_dimension_numbers<[1], [0], [0], [1], [0, 0, 1, 1], [], []>} : vector<2x2xf32>, vector<2x32xf32>, vector<2x32xf32> -> vector<2x32xf32>
    %c0_12 = arith.constant 0 : index
    %c0_13 = arith.constant 0 : index
    %13 = vector.load %arg5[%c0_12, %c0_13] : memref<1x32xf32, #tpu.memory_space<vmem>>, vector<1x32xf32>
    %14 = vector.broadcast %13 : vector<1x32xf32> to vector<2x32xf32>
    %15 = arith.addf %12, %14 : vector<2x32xf32>
    %16 = arith.negf %15 : vector<2x32xf32>
    %17 = math.exp %16 : vector<2x32xf32>
    %cst_14 = arith.constant 1.000000e+00 : f32
    %18 = vector.broadcast %cst_14 : f32 to vector<2x32xf32>
    %19 = arith.addf %18, %17 : vector<2x32xf32>
    %20 = arith.divf %18, %19 : vector<2x32xf32>
    %21 = vector.shape_cast %20 : vector<2x32xf32> to vector<2x1x32xf32>
    %c0_15 = arith.constant 0 : index
    %c0_16 = arith.constant 0 : index
    %c0_17 = arith.constant 0 : index
    %22 = vector.load %arg6[%c0_15, %c0_16, %c0_17] : memref<2x1x32xf32, #tpu.memory_space<vmem>>, vector<2x1x32xf32>
    tpu.vector_store %arg6[%c0_15, %c0_16, %c0_17], %21 {strides = array<i32>} : memref<2x1x32xf32, #tpu.memory_space<vmem>>, vector<2x1x32xf32>,
    return
  }
  func.func @transform_0(%arg0: i32) -> (i32, i32, i32) {
    %c0_i32 = arith.constant 0 : i32
    %c0_i32_0 = arith.constant 0 : i32
    %c0_i32_1 = arith.constant 0 : i32
    return %arg0, %c0_i32, %c0_i32_0 : i32, i32, i32
  }
  func.func @transform_1(%arg0: i32) -> (i32, i32) {
    %c0_i32 = arith.constant 0 : i32
    %c0_i32_0 = arith.constant 0 : i32
    %c0_i32_1 = arith.constant 0 : i32
    return %c0_i32, %c0_i32_0 : i32, i32
  }
  func.func @transform_2(%arg0: i32) -> (i32, i32) {
    %c0_i32 = arith.constant 0 : i32
    %c0_i32_0 = arith.constant 0 : i32
    %c0_i32_1 = arith.constant 0 : i32
    return %c0_i32, %c0_i32_0 : i32, i32
  }
  func.func @transform_3(%arg0: i32) -> (i32, i32) {
    %c0_i32 = arith.constant 0 : i32
    %c0_i32_0 = arith.constant 0 : i32
    %c0_i32_1 = arith.constant 0 : i32
    return %c0_i32, %c0_i32_0 : i32, i32
  }
  func.func @transform_4(%arg0: i32) -> (i32, i32) {
    %c0_i32 = arith.constant 0 : i32
    %c0_i32_0 = arith.constant 0 : i32
    %c0_i32_1 = arith.constant 0 : i32
    return %c0_i32, %c0_i32_0 : i32, i32
  }
  func.func @transform_5(%arg0: i32) -> (i32, i32, i32) {
    %c0_i32 = arith.constant 0 : i32
    %c0_i32_0 = arith.constant 0 : i32
    %c0_i32_1 = arith.constant 0 : i32
    return %arg0, %c0_i32, %c0_i32_0 : i32, i32, i32
  }
}

</mosaic_0001>

<bundles_post_ra>
// kernel: tpu_custom_call.1
= control target key start
LH: loop header
LB: loop body
LE: loop exit
PB: predicated region body
PF: predicated region fallthrough
CT: control target
= control target key end

     0   :  { %10 = vsyncpa [#allocation3], 0  ;;  %s544_s0 = inlined_call_operand.hbm [shape: f32[2,32,256], index: 0, kind: input, shape index: {}]   ;;  %s545_s1 = inlined_call_operand.vmem [shape: f32[32,2], index: 1, kind: input, shape index: {}]   ;;  %s546_s2 = inlined_call_operand.vmem [shape: f32[1,2], index: 2, kind: input, shape index: {}]   ;;  %s547_s3 = inlined_call_operand.vmem [shape: f32[2,32], index: 3, kind: input, shape index: {}]   ;;  %s548_s4 = inlined_call_operand.vmem [shape: f32[1,32], index: 4, kind: input, shape index: {}]   ;;  %s549_s5 = inlined_call_operand.hbm [shape: f32[2,1,32], index: 5, kind: output, shape index: {}]  }
   0x1   :  { %11 = vsyncpa [#allocation4], 0  ;;  %s457_s18 = smov [#allocation2]   ;;  %s409_s22 = scalar_lea.hbm %s544_s0, 2048 }
   0x2   :  { %s17_s19 = sshll.u32 %s457_s18, 4  ;;  %p410_p0 = scmp.ne.s32.totalorder %s544_s0, %s409_s22  ;;  %s18_s19 = int_to_ptr.vmem [resolvable:$true] %s17_s19 }
   0x3   :  { %p413_p1 = scmp.lt.u32.totalorder %s409_s22, %s544_s0 }
   0x5   :  { %p415_p2 = pnand %p413_p1, %p410_p0 }
   0x7   :  { %418 = shalt.err (!%p415_p2)
}
   0x8   :  { %s419_s27 = scalar_lea.vmem %s18_s19, 2048  ;;  %p424_p4 = scmp.lt.s32.totalorder %s18_s19, %s18_s19 }
   0x9   :  { %p420_p3 = scmp.ne.s32.totalorder %s18_s19, %s419_s27  ;;  %p425_p5 = scmp.lt.s32.totalorder %s419_s27, %s419_s27 }
   0xb   :  { %p426_p6 = por %p425_p5, %p424_p4 }
   0xd   :  { %p427_p7 = pnand %p426_p6, %p420_p3 }
   0xf   :  { %430 = shalt.err (!%p427_p7)
}
  0x10   :  { %s458_s28 = smov 256   ;;  %s459_s29 = smov 16  }
  0x11   :  { %23 = dma.hbm_to_vmem [thread:$0]  %s544_s0, 2048, %s18_s19, [#allocation3], %s458_s28, %s458_s28, %s459_s29  }
  0x12   :  { %453 = dma.done.wait [#allocation3], 2048  }
  0x13   :  { %454 = vsyncadd [#allocation3], 4294965248  ;;  %v43_v0 = vld [vmem:[#allocation2 + $0x40] sm:$0xff]  ;;  %v44_v1 = vld [vmem:[#allocation2 + $0x48] sm:$0xff]  ;;  %v460_v27 = vmov 0.0|0.0   ;;  %vm461_vm0 = vmmov 0   ;;  %v102_v32 = vlaneseq }
  0x14   :  { %v35_v2 = vld [vmem:[#allocation2] sm:$0xff]  ;;  %v63_v3 = vadd.f32 %v44_v1, %v43_v0  ;;  %v36_v4 = vld [vmem:[#allocation2 + $0x8] sm:$0xff]  ;;  %v45_v5 = vld [vmem:[#allocation2 + $0x50] sm:$0xff]  ;;  %390 = vmatprep.subr.bf16.mxu0 %v460_v27  ;;  %v462_v31 = vmov 0.0   ;;  %vm113_vm1 = vcmask 130112   ;;  %vm120_vm2 = vcmask 195712  }
  0x15   :  { %v46_v6 = vld [vmem:[#allocation2 + $0x58] sm:$0xff]  ;;  %v51_v7 = vadd.f32 %v36_v4, %v35_v2  ;;  %v37_v8 = vld [vmem:[#allocation2 + $0x10] sm:$0xff]  ;;  %v47_v12 = vld [vmem:[#allocation2 + $0x60] sm:$0xff]  ;;  %382 = vmatprep.mubr.msk.f32.mxu0 %vm461_vm0, %v462_v31  ;;  %385 = vmatprep.subr.mxu1 %v462_v31  ;;  %v103_v34 = vand.u32 127, %v102_v32  ;;  %v105_v39 = vshrl.u32 %v102_v32, 7  ;;  %vm127_vm3 = vcmask 261312  }
  0x16   :  { %v38_v9 = vld [vmem:[#allocation2 + $0x18] sm:$0xff]  ;;  %64 = vadd.xlane.f32.xlu1 %v63_v3  ;;  %v66_v10 = vadd.f32 %v46_v6, %v45_v5  ;;  %v48_v13 = vld [vmem:[#allocation2 + $0x68] sm:$0xff]  ;;  %v39_v14 = vld [vmem:[#allocation2 + $0x20] sm:$0xff]  ;;  %387 = vmatprep.mubr.msk.f32.mxu1 %vm461_vm0, %v462_v31  ;;  %vm148_vm4 = vcmask 1041409   ;;  %vm150_vm5 = vcmask 261120   ;;  %vm236_vm6 = vcmask 1041408  }
  0x17   :  { %52 = vadd.xlane.f32.xlu0 %v51_v7  ;;  %v54_v11 = vadd.f32 %v38_v9, %v37_v8  ;;  %v40_v15 = vld [vmem:[#allocation2 + $0x28] sm:$0xff]  ;;  %v69_v16 = vadd.f32 %v48_v13, %v47_v12  ;;  %v49_v18 = vld [vmem:[#allocation2 + $0x70] sm:$0xff]  ;;  %v50_v19 = vld [vmem:[#allocation2 + $0x78] sm:$0xff]  ;;  %v108_v36 = vadd.s32 4294967288, %v103_v34  ;;  %v115_v38 = vadd.s32 4294967280, %v103_v34 }
  0x18   :  { %v57_v17 = vadd.f32 %v40_v15, %v39_v14  ;;  %v41_v20 = vld [vmem:[#allocation2 + $0x30] sm:$0xff]  ;;  %v42_v21 = vld [vmem:[#allocation2 + $0x38] sm:$0xff]  ;;  %v72_v22 = vadd.f32 %v50_v19, %v49_v18  ;;  %v83_v24 = vld [vmem:[%s545_s1] sm:$0xff]  ;;  %v122_v43 = vadd.s32 4294967272, %v103_v34  ;;  %v106_v47 = vsub.s32 %v103_v34, %v105_v39 }
  0x19   :  { %v60_v23 = vadd.f32 %v42_v21, %v41_v20  ;;  %v84_v25 = vld [vmem:[%s545_s1 + $0x8] sm:$0xff]  ;;  %v85_v28 = vld [vmem:[%s545_s1 + $0x10] sm:$0xff]  ;;  %v86_v29 = vld [vmem:[%s545_s1 + $0x18] sm:$0xff]  ;;  %v111_v41 = vsub.s32 %v108_v36, %v105_v39  ;;  %v118_v45 = vsub.s32 %v115_v38, %v105_v39  ;;  %vm232_vm7 = vcmask 15360  }
  0x1a   :  { %67 = vadd.xlane.f32.xlu1 %v66_v10  ;;  %v391_v26 = vpack.c.bf16 %v84_v25, %v83_v24  ;;  %v394_v30 = vpack.c.bf16 %v86_v29, %v85_v28  ;;  %v125_v54 = vsub.s32 %v122_v43, %v105_v39  ;;  %v224_v9 = vld [vmem:[%s547_s3] sm:$0x3]  ;;  %vm341_vm8 = vcmask 253952  }
  0x1b   :  { %55 = vadd.xlane.f32.xlu0 %v54_v11  ;;  %386 = vmatpush3.msk.msra.mxu1 %vm236_vm6, %v224_v9  ;;  %v361_v10 = vld [vmem:[%s546_s2] ss:$0 sm:$0xff]  ;;  %s464_s2 = smov [#allocation5]  }
  0x1c   :  { %392 = vmatpush3.bf16.msra.mxu0 %v391_v26  ;;  %v363_v15 = vld [vmem:[%s548_s4] ss:$0 sm:$0xff]  ;;  %s349_s3 = sshll.u32 %s464_s2, 4  ;;  %s350_s3 = int_to_ptr.vmem [resolvable:$true] %s349_s3 }
  0x1d   :  { %393 = vmatprep.subr.bf16.mxu0 %v460_v27  ;;  %s431_s4 = scalar_lea.vmem %s350_s3, 32  ;;  %p436_p9 = scmp.lt.s32.totalorder %s350_s3, %s350_s3 }
  0x1e   :  { %70 = vadd.xlane.f32.xlu1 %v69_v16  ;;  %p432_p8 = scmp.ne.s32.totalorder %s350_s3, %s431_s4  ;;  %p437_p10 = scmp.lt.s32.totalorder %s431_s4, %s431_s4 }
  0x1f   :  { %58 = vadd.xlane.f32.xlu0 %v57_v17 }
  0x20   :  { %395 = vmatpush3.bf16.msra.mxu0 %v394_v30  ;;  %p438_p11 = por %p437_p10, %p436_p9 }
  0x22   :  { %73 = vadd.xlane.f32.xlu1 %v72_v22  ;;  %v463_v22 = vmov 1966171168   ;;  %p439_p12 = pnand %p438_p11, %p432_p8 }
  0x23   :  { %61 = vadd.xlane.f32.xlu0 %v60_v23  ;;  %v318_v23 = vunpack.c.l.s4 %v463_v22 }
  0x25   :  { %v319_v24 = vunpack.c.0.s8 %v318_v23 }
  0x27   :  { %v322_v25 = vsub.s32 %v319_v24, %v105_v39 }
  0xa3   :  { %v65_v33 = vpop.xlane.xlu1 %64 }
  0xa4   :  { %v53_v35 = vpop.xlane.xlu0 %52  ;;  %v79_v48 = vmul.f32 0.00390625, %v65_v33 }
  0xa5   :  { %v75_v51 = vmul.f32 0.00390625, %v53_v35 }
  0xa6   :  { %v132_v58 = vrot.slane %v79_v48, %v106_v47 }
  0xa7   :  { %v68_v37 = vpop.xlane.xlu1 %67  ;;  %v107_v62 = vrot.slane %v75_v51, %v106_v47 }
  0xa8   :  { %v56_v40 = vpop.xlane.xlu0 %55  ;;  %v80_v42 = vmul.f32 0.00390625, %v68_v37 }
  0xa9   :  { %v76_v44 = vmul.f32 0.00390625, %v56_v40 }
  0xaa   :  { %v136_v53 = vrot.slane %v80_v42, %v111_v41 }
  0xab   :  { %v71_v46 = vpop.xlane.xlu1 %70  ;;  %v112_v55 = vrot.slane %v76_v44, %v111_v41 }
  0xac   :  { %v81_v49 = vmul.f32 0.00390625, %v71_v46  ;;  %v59_v50 = vpop.xlane.xlu0 %58  ;;  %v137_v0 = vsel %vm113_vm1, %v136_v53, %v132_v58 }
  0xad   :  { %v77_v52 = vmul.f32 0.00390625, %v59_v50  ;;  %v114_v2 = vsel %vm113_vm1, %v112_v55, %v107_v62 }
  0xae   :  { %v141_v56 = vrot.slane %v81_v49, %v118_v45 }
  0xaf   :  { %v74_v57 = vpop.xlane.xlu1 %73  ;;  %v119_v59 = vrot.slane %v77_v52, %v118_v45 }
  0xb0   :  { %v82_v60 = vmul.f32 0.00390625, %v74_v57  ;;  %v62_v61 = vpop.xlane.xlu0 %61  ;;  %v142_v3 = vsel %vm120_vm2, %v141_v56, %v137_v0 }
  0xb1   :  { %v78_v63 = vmul.f32 0.00390625, %v62_v61  ;;  %v121_v5 = vsel %vm120_vm2, %v119_v59, %v114_v2 }
  0xb2   :  { %v146_v1 = vrot.slane %v82_v60, %v125_v54 }
  0xb3   :  { %v126_v4 = vrot.slane %v78_v63, %v125_v54 }
  0xb4   :  { %v147_v6 = vsel %vm127_vm3, %v146_v1, %v142_v3 }
  0xb5   :  { %v128_v7 = vsel %vm127_vm3, %v126_v4, %v121_v5 }
  0xb6   :  { %v149_v8 = vsel %vm148_vm4, %v147_v6, %v128_v7 }
  0xb7   :  { %383 = vmatmul.mubr.msk.f32.vlgmr.msra.gmra.mrb[0].mxu0 %vm150_vm5, %v149_v8 }
 0x18a   :  { %v219_v11 = vpop.f32.mrb[0].mxu0 }
 0x18b   :  { %v220_v12 = vadd.f32 %v361_v10, %v219_v11  ;;  %v384_v13 = vpop.f32.mrb[1].mxu0 }
 0x18d   :  { %v223_v14 = vmax.f32 %v220_v12, 0.0 }
 0x18f   :  { %388 = vmatmul.mubr.msk.f32.vlgmr.msra.gmra.mrb[0].mxu1 %vm232_vm7, %v223_v14 }
 0x262   :  { %v306_v16 = vpop.f32.mrb[0].mxu1 }
 0x263   :  { %v307_v17 = vadd.f32 %v363_v15, %v306_v16  ;;  %v389_v18 = vpop.f32.mrb[1].mxu1 }
 0x265   :  { %v366_v19 = vmul.f32 -1.442695, %v307_v17 }
 0x267   :  { %405 = vpow2.f32 %v366_v19 }
 0x271   :  { %v406_v20 = vpop.eup %405 }
 0x272   :  { %v313_v21 = vadd.f32 1.0, %v406_v20 }
 0x274   :  { %407 = vrcp.f32 %v313_v21 }
 0x27e   :  { %v408_v26 = vpop.eup %407 }
 0x27f   :  { %v323_v27 = vrot.slane %v408_v26, %v322_v25 }
 0x281   :  { %v324_v28 = vcombine.high %v323_v27, %v323_v27  ;;  %v331_v29 = vrot.slane %v323_v27, %v322_v25 }
 0x283   :  { %v338_v30 = vrot.slane %v324_v28, %v322_v25  ;;  %342 = vst.msk [vmem:[#allocation5] sm:$0x1] %vm341_vm8, %v331_v29 }
 0x285   :  { %343 = vst.msk [vmem:[#allocation5 + $0x1] sm:$0x1] %vm341_vm8, %v338_v30 }
 0x286   :  { %442 = shalt.err (!%p439_p12)
}
 0x287   :  { %s443_s21 = scalar_lea.hbm %s549_s5, 32 }
 0x288   :  { %p444_p13 = scmp.ne.s32.totalorder %s549_s5, %s443_s21  ;;  %p447_p0 = scmp.lt.u32.totalorder %s443_s21, %s549_s5 }
 0x28a   :  { %p449_p1 = pnand %p447_p0, %p444_p13 }
 0x28c   :  { %452 = shalt.err (!%p449_p1)
}
 0x28d   :  { %s465_s26 = smov 1  }
 0x28e   :  { %355 = dma.vmem_to_hbm [thread:$0]  %s350_s3, 32, %s549_s5, [#allocation4], %s459_s29, %s459_s29, %s465_s26  }
 0x28f   :  { %455 = dma.done.wait [#allocation4], 32  }
 0x290   :  { %456 = vsyncadd [#allocation4], 4294967264 }
 0x291   :  { %359 = vsyncpa [#allocation3], 1 }
 0x292   :  { %360 = vsyncpa [#allocation4], 1 }

</bundles_post_ra>
